<compile_context>
chip_gen: v6e
topology: v6e:2x2x1
jax: 0.10.0
libtpu: 0.0.40
codegen_flags: <defaults>
</compile_context>

<pallas_src>
import functools
import math

import jax
import jax.numpy as jnp
from jax import lax
from jax.experimental import pallas as pl
from jax.experimental.pallas import tpu as pltpu

_LN2 = math.log(2.0)


def _softplus(x):
    # Overflow-safe log(1 + exp(x)) = max(x, 0) + log(1 + exp(-|x|)).  Kept in f32:
    # bf16 softplus only helps EUP-bound small-d cases and risks accuracy at large alpha.
    return jnp.maximum(x, 0.0) + jnp.log(1.0 + jnp.exp(-jnp.abs(x)))


def _round_up(x: int, m: int) -> int:
    return ((x + m - 1) // m) * m


def _normalize_kernel(q_ref, k_ref, qn_ref, kn_ref, *, alpha: float, tile: int,
                      n_valid: int, n_pad: int):
    """Row-tiled: write alpha * q/||q|| and k/||k|| as bf16. Padded rows -> 0."""
    q = q_ref[...].astype(jnp.float32)
    k = k_ref[...].astype(jnp.float32)
    # Row L2 normalization via rsqrt (EUP slot); fold alpha into qn so both
    # similarity matrices come out of the MXU already scaled by alpha.
    q_scale = lax.rsqrt(jnp.sum(q * q, axis=1, keepdims=True)) * alpha
    k_scale = lax.rsqrt(jnp.sum(k * k, axis=1, keepdims=True))
    if n_pad != n_valid:  # static: mask only generated when padding exists
        row0 = pl.program_id(0) * tile
        rows = lax.broadcasted_iota(jnp.int32, (tile, 1), 0) + row0
        is_valid = rows < n_valid
        q_scale = jnp.where(is_valid, q_scale, 0.0)   # pad rows -> exactly 0 (no NaN)
        k_scale = jnp.where(is_valid, k_scale, 0.0)
    qn_ref[...] = (q * q_scale).astype(jnp.bfloat16)   # alpha * normalized q
    kn_ref[...] = (k * k_scale).astype(jnp.bfloat16)   # normalized k


def _soft_triplet_partial_kernel(qn_ref, kn_ref, out_ref, *, tile: int,
                                 n_valid: int, n_pad: int):
    """Per-row-tile partial sum of softplus terms for both loss directions."""
    i = pl.program_id(0)
    row0 = pl.multiple_of(i * tile, tile)
    qt = qn_ref[pl.ds(row0, tile), :]        # (tile, d) bf16, alpha folded in
    kt = kn_ref[pl.ds(row0, tile), :]        # (tile, d) bf16

    # Positive (diagonal) similarities for this row tile: alpha * <qn_i, kn_i> (VPU, f32).
    diag = jnp.sum(qt.astype(jnp.float32) * kt.astype(jnp.float32),
                   axis=1, keepdims=True)    # (tile, 1)

    if n_pad != n_valid:  # static: only emit masks when padding exists
        rows = lax.broadcasted_iota(jnp.int32, (tile, n_pad), 0) + row0
        cols = lax.broadcasted_iota(jnp.int32, (tile, n_pad), 1)
        valid = (rows < n_valid) & (cols < n_valid)
    else:
        valid = None

    nt = (((1,), (1,)), ((), ()))  # contract feature dim: A @ B.T, no transpose

    # single_forward(q, k): rows of alpha*qn against all of kn (bf16 ops, f32 acc).
    sim_qk = lax.dot_general(qt, kn_ref[...], nt, preferred_element_type=jnp.float32)
    t1 = _softplus(sim_qk - diag)
    if valid is not None:
        t1 = jnp.where(valid, t1, 0.0)
    partial = jnp.sum(t1)          # reduce before the second dot: lower peak live temps

    # single_forward(k, q): rows of kn against all of alpha*qn (same diagonal slice).
    sim_kq = lax.dot_general(kt, qn_ref[...], nt, preferred_element_type=jnp.float32)
    t2 = _softplus(sim_kq - diag)
    if valid is not None:
        t2 = jnp.where(valid, t2, 0.0)
    partial = partial + jnp.sum(t2)

    out_ref[0, 0] = partial


def _vmem_capacity_bytes() -> int:
    try:
        cap = int(pltpu.get_tpu_info().vmem_capacity_bytes)
        if cap > 0:
            return cap
    except Exception:
        pass
    return 64 << 20   # conservative fallback (v7x per-core VMEM)


def _pick_row_tile(n: int, d: int, vmem_cap: int) -> int:
    """Largest sublane-aligned row tile whose working set fits a VMEM budget."""
    budget = int(vmem_cap * 0.6)          # headroom for Mosaic internals / sems / masks
    n8 = _round_up(n, 8)
    for t in (512, 256, 128, 64, 32, 16, 8):
        if t > n8:
            continue
        n_pad = _round_up(n, t)
        resident = 2 * n_pad * d * 2                       # bf16 qn_a + kn (single buffer)
        live = 5 * t * n_pad * 4 + 24 * t * d              # sim/softplus temps + tile slices
        if resident + live <= budget:
            return t
    return 8


def soft_triplet_loss(inputs_q, inputs_k, alpha: float = 10.0, row_tile: int | None = None):
    """Scalar f32 loss matching SoftTripletLoss(alpha=alpha)(inputs_q, inputs_k)."""
    assert inputs_q.shape == inputs_k.shape and inputs_q.ndim == 2
    n, d = inputs_q.shape
    assert n >= 2, "n*(n-1) denominator: need at least 2 samples"

    cap = _vmem_capacity_bytes()
    if row_tile is None:
        row_tile = _pick_row_tile(n, d, cap)
    assert row_tile >= 8 and row_tile % 8 == 0

    n_pad = _round_up(n, row_tile)
    num_tiles = n_pad // row_tile

    q, k = inputs_q, inputs_k
    if n_pad != n:
        pad = ((0, n_pad - n), (0, 0))
        q = jnp.pad(q, pad)
        k = jnp.pad(k, pad)

    vmem_limit = max(32 << 20, int(cap * 0.85))
    cparams = pltpu.CompilerParams(
        dimension_semantics=("parallel",),       # no carried state -> megacore-splittable
        vmem_limit_bytes=vmem_limit,
    )

    # Pass 1: normalization (row-tiled, parallel), bf16 outputs.
    norm_kernel = functools.partial(_normalize_kernel, alpha=float(alpha),
                                    tile=row_tile, n_valid=n, n_pad=n_pad)
    qn_a, kn = pl.pallas_call(
        norm_kernel,
        out_shape=(jax.ShapeDtypeStruct((n_pad, d), jnp.bfloat16),
                   jax.ShapeDtypeStruct((n_pad, d), jnp.bfloat16)),
        grid_spec=pltpu.PrefetchScalarGridSpec(
            num_scalar_prefetch=0,
            grid=(num_tiles,),
            in_specs=[pl.BlockSpec((row_tile, d), lambda i: (i, 0)),
                      pl.BlockSpec((row_tile, d), lambda i: (i, 0))],
            out_specs=(pl.BlockSpec((row_tile, d), lambda i: (i, 0)),
                       pl.BlockSpec((row_tile, d), lambda i: (i, 0))),
        ),
        compiler_params=cparams,
    )(q, k)

    # Pass 2: row-tiled similarity + softplus partial sums. Normalized matrices are
    # untiled VMEM operands (single buffer, no double-buffering), tiles sliced in-kernel.
    main_kernel = functools.partial(_soft_triplet_partial_kernel,
                                    tile=row_tile, n_valid=n, n_pad=n_pad)
    partials = pl.pallas_call(
        main_kernel,
        out_shape=jax.ShapeDtypeStruct((num_tiles, 1), jnp.float32),
        grid_spec=pltpu.PrefetchScalarGridSpec(
            num_scalar_prefetch=0,
            grid=(num_tiles,),
            in_specs=[pl.BlockSpec(memory_space=pltpu.MemorySpace.VMEM),
                      pl.BlockSpec(memory_space=pltpu.MemorySpace.VMEM)],
            out_specs=pl.BlockSpec((1, 1), lambda i: (i, 0),
                                   memory_space=pltpu.MemorySpace.SMEM),
        ),
        compiler_params=cparams,
    )(qn_a, kn)

    # Tiny reduction in the wrapper. Each of the 2n valid diagonal terms contributed
    # exactly softplus(0) = log(2); subtract analytically instead of masking.
    total = jnp.sum(partials) - 2.0 * n * _LN2
    return total * (0.5 / (n * (n - 1)))


def _reference(inputs_q, inputs_k, alpha=10.0):
    # Pure-JAX reference mirroring the PyTorch module.
    def single(a, b):
        n = a.shape[0]
        na = a / jnp.linalg.norm(a, axis=1, keepdims=True)
        nb = b / jnp.linalg.norm(b, axis=1, keepdims=True)
        sim = jnp.matmul(na, nb.T, precision=jax.lax.Precision.HIGHEST)
        diag = jnp.diag(sim)[:, None]
        mask = ~jnp.eye(n, dtype=bool)
        terms = jnp.log(1.0 + jnp.exp((sim - diag) * alpha))
        return jnp.sum(jnp.where(mask, terms, 0.0)) / (n * (n - 1))

    return 0.5 * (single(inputs_q, inputs_k) + single(inputs_k, inputs_q))


if __name__ == "__main__":
    key = jax.random.PRNGKey(0)
    kq, kk = jax.random.split(key)
    n, d = 64, 32   # small: 64 embeddings of dim 32
    inputs_q = jax.random.normal(kq, (n, d), dtype=jnp.float32)
    inputs_k = jax.random.normal(kk, (n, d), dtype=jnp.float32)
    ref = _reference(inputs_q, inputs_k, alpha=10.0)

    # Explicit row_tile=16 -> 4 independent grid steps (exercises partial outputs).
    loss = jax.block_until_ready(
        soft_triplet_loss(inputs_q, inputs_k, alpha=10.0, row_tile=16))
    assert jnp.allclose(loss, ref, rtol=1e-2, atol=1e-2), (loss, ref)

    # Auto tile selection (single step here).
    loss_auto = jax.block_until_ready(soft_triplet_loss(inputs_q, inputs_k, alpha=10.0))
    assert jnp.allclose(loss_auto, ref, rtol=1e-2, atol=1e-2), (loss_auto, ref)

    # Ragged n (not a multiple of the tile): exercises pad + mask path.
    n2 = 40
    q2, k2 = inputs_q[:n2], inputs_k[:n2]
    loss_ragged = jax.block_until_ready(
        soft_triplet_loss(q2, k2, alpha=10.0, row_tile=16))
    ref_ragged = _reference(q2, k2, alpha=10.0)
    assert jnp.allclose(loss_ragged, ref_ragged, rtol=1e-2, atol=1e-2), (loss_ragged, ref_ragged)

    print("KERNEL_OK")
</pallas_src>

<mosaic_0001>
module attributes {stable_mosaic.version = 11 : i64} {
  func.func @_normalize_kernel(%arg0: i32, %arg1: memref<16x32xf32, #tpu.memory_space<vmem>>, %arg2: memref<16x32xf32, #tpu.memory_space<vmem>>, %arg3: memref<16x32xbf16, #tpu.memory_space<vmem>>, %arg4: memref<16x32xbf16, #tpu.memory_space<vmem>>) attributes {dimension_semantics = [#tpu.dimension_semantics<parallel>], iteration_bounds = array<i64: 4>, scalar_prefetch = 0 : i64, scratch_operands = 0 : i64, tpu.core_type = #tpu.core_type<tc>, window_params = [{transform_indices = @transform_0, window_bounds = array<i64: 16, 32>}, {transform_indices = @transform_1, window_bounds = array<i64: 16, 32>}, {transform_indices = @transform_2, window_bounds = array<i64: 16, 32>}, {transform_indices = @transform_3, window_bounds = array<i64: 16, 32>}]} {
    %c0 = arith.constant 0 : index
    %c0_0 = arith.constant 0 : index
    %0 = vector.load %arg1[%c0, %c0_0] : memref<16x32xf32, #tpu.memory_space<vmem>>, vector<16x32xf32>
    %c0_1 = arith.constant 0 : index
    %c0_2 = arith.constant 0 : index
    %1 = vector.load %arg2[%c0_1, %c0_2] : memref<16x32xf32, #tpu.memory_space<vmem>>, vector<16x32xf32>
    %2 = arith.mulf %0, %0 : vector<16x32xf32>
    %cst = arith.constant dense<0.000000e+00> : vector<16xf32>
    %3 = vector.multi_reduction <add>, %2, %cst [1] : vector<16x32xf32> to vector<16xf32>
    %4 = vector.shape_cast %3 : vector<16xf32> to vector<16x1xf32>
    %5 = math.rsqrt %4 : vector<16x1xf32>
    %cst_3 = arith.constant 1.000000e+01 : f32
    %6 = vector.broadcast %cst_3 : f32 to vector<16x1xf32>
    %7 = arith.mulf %5, %6 : vector<16x1xf32>
    %8 = arith.mulf %1, %1 : vector<16x32xf32>
    %cst_4 = arith.constant dense<0.000000e+00> : vector<16xf32>
    %9 = vector.multi_reduction <add>, %8, %cst_4 [1] : vector<16x32xf32> to vector<16xf32>
    %10 = vector.shape_cast %9 : vector<16xf32> to vector<16x1xf32>
    %11 = math.rsqrt %10 : vector<16x1xf32>
    %12 = vector.broadcast %7 : vector<16x1xf32> to vector<16x32xf32>
    %13 = arith.mulf %0, %12 : vector<16x32xf32>
    %14 = arith.truncf %13 : vector<16x32xf32> to vector<16x32xbf16>
    %c0_5 = arith.constant 0 : index
    %c0_6 = arith.constant 0 : index
    %15 = vector.load %arg3[%c0_5, %c0_6] : memref<16x32xbf16, #tpu.memory_space<vmem>>, vector<16x32xbf16>
    tpu.vector_store %arg3[%c0_5, %c0_6], %14 {strides = array<i32>} : memref<16x32xbf16, #tpu.memory_space<vmem>>, vector<16x32xbf16>,
    %16 = vector.broadcast %11 : vector<16x1xf32> to vector<16x32xf32>
    %17 = arith.mulf %1, %16 : vector<16x32xf32>
    %18 = arith.truncf %17 : vector<16x32xf32> to vector<16x32xbf16>
    %c0_7 = arith.constant 0 : index
    %c0_8 = arith.constant 0 : index
    %19 = vector.load %arg4[%c0_7, %c0_8] : memref<16x32xbf16, #tpu.memory_space<vmem>>, vector<16x32xbf16>
    tpu.vector_store %arg4[%c0_7, %c0_8], %18 {strides = array<i32>} : memref<16x32xbf16, #tpu.memory_space<vmem>>, vector<16x32xbf16>,
    return
  }
  func.func @transform_0(%arg0: i32) -> (i32, i32) {
    %c0_i32 = arith.constant 0 : i32
    %c0_i32_0 = arith.constant 0 : i32
    return %arg0, %c0_i32 : i32, i32
  }
  func.func @transform_1(%arg0: i32) -> (i32, i32) {
    %c0_i32 = arith.constant 0 : i32
    %c0_i32_0 = arith.constant 0 : i32
    return %arg0, %c0_i32 : i32, i32
  }
  func.func @transform_2(%arg0: i32) -> (i32, i32) {
    %c0_i32 = arith.constant 0 : i32
    %c0_i32_0 = arith.constant 0 : i32
    return %arg0, %c0_i32 : i32, i32
  }
  func.func @transform_3(%arg0: i32) -> (i32, i32) {
    %c0_i32 = arith.constant 0 : i32
    %c0_i32_0 = arith.constant 0 : i32
    return %arg0, %c0_i32 : i32, i32
  }
}

</mosaic_0001>

<bundles_post_ra>
// kernel: tpu_custom_call.1
= control target key start
LH: loop header
LB: loop body
LE: loop exit
PB: predicated region body
PF: predicated region fallthrough
CT: control target
= control target key end

     0   :  { %s431_s12 = smov 0   ;;  %s458_s0 = inlined_call_operand.vmem [shape: f32[64,32], index: 0, kind: input, shape index: {}]   ;;  %s459_s1 = inlined_call_operand.vmem [shape: f32[64,32], index: 1, kind: input, shape index: {}]   ;;  %s460_s2 = inlined_call_operand.vmem [shape: bf16[64,32], index: 2, kind: output, shape index: {0}]   ;;  %s461_s3 = inlined_call_operand.vmem [shape: bf16[64,32], index: 3, kind: output, shape index: {1}]  }
   0x1 LB: > { %s364_s13 = sadd.s32 4294967295, %s409_s12   ;;  %p368_p0 = scmp.ge.s32.totalorder %s409_s12, 1  ;;  %s409_s12 = sphi %s431_s12, %s14_s12  }
   0x2   : > { %p152_p1 = scmp.lt.s32.totalorder %s409_s12, 5 }
   0x4   : > { %p153_p2 = pnand %p368_p0, %p152_p1 }
   0x5   : > { %s369_s14 = sshll.u32 (!%p153_p2), %s364_s13, 1 }
   0x6   : > { %156 = sbr.rel (%p153_p2) target bundleno = 181 (0xb5), region = 28  ;;  %p187_p3 = scmp.lt.s32.totalorder (!%p153_p2), %s369_s14, 7 }
   0xb   : > { %s463_s14 = smov (!%p187_p3, %s369_s14), 7  ;;  %vm216_vm0 = vcmask 261120   ;;  %vm247_vm1 = vcmask 257024  }
   0xc   : > { %s370_s15 = sshll.u32 %s463_s14, 3  ;;  %s374_s22 = sshll.u32 %s463_s14, 2 }
   0xd   : > { %s190_s18 = scalar_lea.vmem %s458_s0, %s370_s15  ;;  %s196_s21 = scalar_lea.vmem %s459_s1, %s370_s15 }
   0xe   : > { %v210_v0 = vld [vmem:[%s190_s18] sm:$0xff]  ;;  %v211_v1 = vld [vmem:[%s190_s18 + $0x8] sm:$0xff]  ;;  %s208_s25 = scalar_lea.vmem %s461_s3, %s374_s22  ;;  %s202_s28 = scalar_lea.vmem %s460_s2, %s374_s22 }
   0xf   : > { %v214_v2 = vmul.f32 %v210_v0, %v210_v0  ;;  %v212_v3 = vld [vmem:[%s196_s21] sm:$0xff]  ;;  %v215_v4 = vmul.f32 %v211_v1, %v211_v1  ;;  %v213_v5 = vld [vmem:[%s196_s21 + $0x8] sm:$0xff] }
  0x10   : > { %v227_v6 = vmul.f32 %v212_v3, %v212_v3  ;;  %v228_v7 = vmul.f32 %v213_v5, %v213_v5 }
  0x11   : > { %v217_v8 = vsel %vm216_vm0, %v214_v2, 0.0  ;;  %v220_v10 = vsel %vm216_vm0, %v215_v4, 0.0 }
  0x12   : > { %218 = vadd.xlane.f32.xlu0 %v217_v8  ;;  %v229_v9 = vsel %vm216_vm0, %v227_v6, 0.0  ;;  %v232_v11 = vsel %vm216_vm0, %v228_v7, 0.0 }
  0x13   : > { %230 = vadd.xlane.f32.xlu1 %v229_v9 }
  0x16   : > { %221 = vadd.xlane.f32.xlu0 %v220_v10 }
  0x17   : > { %233 = vadd.xlane.f32.xlu1 %v232_v11 }
  0x9b   : > { %v219_v12 = vpop.xlane.xlu0 %218 }
  0x9c   : > { %395 = vrsqrt.f32 %v219_v12  ;;  %v231_v13 = vpop.xlane.xlu1 %230 }
  0x9d   : > { %397 = vrsqrt.f32 %v231_v13 }
  0x9f   : > { %v222_v14 = vpop.xlane.xlu0 %221 }
  0xa0   : > { %399 = vrsqrt.f32 %v222_v14  ;;  %v234_v15 = vpop.xlane.xlu1 %233 }
  0xa1   : > { %401 = vrsqrt.f32 %v234_v15 }
  0xa9   : > { %v396_v16 = vpop.eup %395 }
  0xaa   : > { %v398_v17 = vpop.eup %397  ;;  %v225_v18 = vmul.f32 10.0, %v396_v16 }
  0xab   : > { %v250_v19 = vmul.f32 %v398_v17, %v212_v3 }
  0xac   : > { %v237_v20 = vmul.f32 %v225_v18, %v210_v0 }
  0xad   : > { %v400_v21 = vpop.eup %399  ;;  %v385_v22 = vpack.c.bf16 %v250_v19, %v250_v19 }
  0xae   : > { %v402_v23 = vpop.eup %401  ;;  %v383_v24 = vpack.c.bf16 %v237_v20, %v237_v20  ;;  %v226_v25 = vmul.f32 10.0, %v400_v21 }
  0xaf   : > { %260 = vst.msk [vmem:[%s208_s25] sm:$0xf] %vm247_vm1, %v385_v22  ;;  %v251_v26 = vmul.f32 %v402_v23, %v213_v5 }
  0xb0   : > { %248 = vst.msk [vmem:[%s202_s28] sm:$0xf] %vm247_vm1, %v383_v24  ;;  %v238_v27 = vmul.f32 %v226_v25, %v211_v1 }
  0xb1   : > { %v386_v28 = vpack.c.bf16 %v251_v26, %v251_v26 }
  0xb2   : > { %v384_v29 = vpack.c.bf16 %v238_v27, %v238_v27 }
  0xb3   : > { %261 = vst.msk [vmem:[%s208_s25 + $0x4] sm:$0xf] %vm247_vm1, %v386_v28 }
  0xb4   : > { %249 = vst.msk [vmem:[%s202_s28 + $0x4] sm:$0xf] %vm247_vm1, %v384_v29 }
  0xb5 PF: > { %s14_s12 = sadd.s32 1, %s409_s12  }
  0xb6   : > { %p11_p4 = scmp.ge.s32.totalorder %s14_s12, 6  }
  0xb8   :  { %13 = sbr.rel (!%p11_p4) target bundleno = 1 (0x1), region = 73 }

</bundles_post_ra>
